<compile_context>
chip_gen: v6e
topology: v6e:2x2x1
jax: 0.10.0
libtpu: 0.0.40
codegen_flags: <defaults>
</compile_context>

<pallas_src>
import numpy as np

import jax
import jax.numpy as jnp
from jax.experimental import pallas as pl
from jax.experimental.pallas import tpu as pltpu

MEAN = 0.1307
SIGMA = 0.3081


# ---------------------------------------------------------------------------
# Fused whole-network kernel: chain of GEMM + bias (+ ReLU), all in VMEM.
# ---------------------------------------------------------------------------
def _make_fused_mlp_kernel(relu_flags):
    """Returns kernel(x_ref, w0_ref, b0_ref, w1_ref, b1_ref, ..., o_ref).

    Every layer is a single MXU GEMM with f32 accumulation plus a fused bias
    add / ReLU on the VPU.  Intermediate activations never leave VMEM; only
    the final (batch_tile, n_class) block is written to HBM.
    """
    def kernel(*refs):
        x_ref, o_ref = refs[0], refs[-1]
        h = x_ref[...].astype(jnp.float32)
        for i, relu in enumerate(relu_flags):
            w = refs[1 + 2 * i][...]
            b = refs[2 + 2 * i][...]
            h = jnp.dot(h, w, preferred_element_type=jnp.float32) + b
            if relu:
                h = jnp.maximum(h, 0.0)
        o_ref[...] = h.astype(o_ref.dtype)

    return kernel


def conv_forward(x, folded_layers, *, batch_block=256):
    """Full network forward = ONE fused Pallas kernel.

    folded_layers: list of (W (in, out), b (1, out), relu: bool) produced by
    fold_network_params() -- conv layers already lowered to dense matrices and
    Normalization folded into the first layer.
    """
    B = x.shape[0]
    h0 = x.reshape(B, -1)                     # NCHW flatten (free on contiguous)
    k0 = h0.shape[1]
    n_out = folded_layers[-1][0].shape[1]
    relu_flags = tuple(r for (_, _, r) in folded_layers)

    # Single "parallel" grid axis over batch tiles: weights stay VMEM-resident
    # across steps; large batches pipeline HBM<->VMEM and use both TCs on v7x.
    bt = B if B <= batch_block else batch_block
    Bp = ((B + bt - 1) // bt) * bt
    if Bp != B:
        h0 = jnp.pad(h0, ((0, Bp - B), (0, 0)))

    in_specs = [pl.BlockSpec((bt, k0), lambda i: (i, 0))]
    operands = [h0]
    for (w, b, _) in folded_layers:
        in_specs.append(pl.BlockSpec(w.shape, lambda i: (0, 0)))
        in_specs.append(pl.BlockSpec(b.shape, lambda i: (0, 0)))
        operands += [w, b]

    out = pl.pallas_call(
        _make_fused_mlp_kernel(relu_flags),
        out_shape=jax.ShapeDtypeStruct((Bp, n_out), x.dtype),
        grid=(Bp // bt,),
        in_specs=in_specs,
        out_specs=pl.BlockSpec((bt, n_out), lambda i: (i, 0)),
        compiler_params=pltpu.CompilerParams(dimension_semantics=("parallel",)),
    )(*operands)

    return out if Bp == B else out[:B]


# ---------------------------------------------------------------------------
# One-time (host-side) parameter folding: Conv2d -> dense, Normalization fold.
# ---------------------------------------------------------------------------
def conv_layer_as_dense(w, b, h_in, w_in, stride, pad):
    """Lower Conv2d (NCHW, zero padding) to a dense matrix A and bias c with
        flatten_NCHW(conv2d(x, w) + b) == flatten_NCHW(x) @ A + c
    A: (Cin*H*W, Cout*Ho*Wo), c: (1, Cout*Ho*Wo).  Done once on the host; not
    part of the per-input forward pass."""
    w = np.asarray(w)
    b = np.asarray(b)
    cout, cin, kh, kw = w.shape
    ho = (h_in + 2 * pad - kh) // stride + 1
    wo = (w_in + 2 * pad - kw) // stride + 1
    A = np.zeros((cin, h_in, w_in, cout, ho, wo), dtype=w.dtype)
    for i_ho in range(ho):
        for i_wo in range(wo):
            for i_kh in range(kh):
                ih = i_ho * stride - pad + i_kh
                if ih < 0 or ih >= h_in:
                    continue
                for i_kw in range(kw):
                    iw = i_wo * stride - pad + i_kw
                    if iw < 0 or iw >= w_in:
                        continue
                    A[:, ih, iw, :, i_ho, i_wo] += w[:, :, i_kh, i_kw].T
    A = A.reshape(cin * h_in * w_in, cout * ho * wo)
    c = np.broadcast_to(b[:, None, None], (cout, ho, wo)).reshape(1, -1).astype(w.dtype)
    return jnp.asarray(A), jnp.asarray(c), ho, wo


def fold_network_params(conv_params, fc_params, conv_cfg, input_size, in_channels=1):
    """Fold the whole Sequential into (W (in,out), b (1,out), relu) GEMM layers.

      * Each Conv2d is lowered to a dense matrix on the NCHW-flattened
        activation (zero padding included), so Flatten is the identity.
      * FC weights are pre-transposed once to (in, out); biases become (1, out)
        (no per-forward-call transposes in the wrapper).
      * Normalization is folded exactly into the first layer:
        norm(x) @ W + b == x @ (W/SIGMA) + (b - MEAN * sum_rows(W/SIGMA)).
    """
    layers = []
    H = W_img = input_size
    for (w, b), (_n_ch, _k, stride, pad) in zip(conv_params, conv_cfg):
        A, c, H, W_img = conv_layer_as_dense(w, b, H, W_img, stride, pad)
        layers.append([A, c, True])

    n_fc = len(fc_params)
    for i, (w, b) in enumerate(fc_params):
        wt = jnp.asarray(np.asarray(w).T)               # (in, out), done once
        bf = jnp.asarray(np.asarray(b).reshape(1, -1))  # (1, out)
        layers.append([wt, bf, i + 1 < n_fc])

    W0, b0, r0 = layers[0]
    W0 = W0 * jnp.float32(1.0 / SIGMA)
    b0 = b0 - jnp.float32(MEAN) * jnp.sum(W0, axis=0, keepdims=True)
    layers[0] = [W0, b0, r0]
    return [tuple(l) for l in layers]


# ---------------------------------------------------------------------------
# Pure-JAX reference (mirrors the PyTorch module exactly)
# ---------------------------------------------------------------------------
def reference_forward(x, conv_params, fc_params, conv_cfg):
    h = (x - MEAN) / SIGMA
    for (w, b), (_, _, stride, pad) in zip(conv_params, conv_cfg):
        h = jax.lax.conv_general_dilated(
            h, w, window_strides=(stride, stride),
            padding=[(pad, pad), (pad, pad)],
            dimension_numbers=("NCHW", "OIHW", "NCHW"))
        h = jnp.maximum(h + b.reshape(1, -1, 1, 1), 0.0)
    h = h.reshape(h.shape[0], -1)
    for i, (w, b) in enumerate(fc_params):
        h = h @ w.T + b
        if i + 1 < len(fc_params):
            h = jnp.maximum(h, 0.0)
    return h


if __name__ == "__main__":
    key = jax.random.PRNGKey(0)
    keys = iter(jax.random.split(key, 16))

    # Small config consistent with Conv(__init__): 1 input channel (MNIST-like)
    B = 2
    input_size = 16
    conv_cfg = [(4, 3, 2, 1), (8, 3, 2, 1)]   # (n_channels, kernel, stride, padding)
    fc_cfg = [32, 10]                          # last entry = n_class

    x = jax.random.uniform(next(keys), (B, 1, input_size, input_size),
                           dtype=jnp.float32)

    conv_params = []
    prev_c, img = 1, input_size
    for (n_ch, k, s, p) in conv_cfg:
        fan_in = prev_c * k * k
        w = jax.random.normal(next(keys), (n_ch, prev_c, k, k),
                              jnp.float32) * (1.0 / fan_in) ** 0.5
        b = jax.random.normal(next(keys), (n_ch,), jnp.float32) * 0.1
        conv_params.append((w, b))
        prev_c, img = n_ch, img // s

    fc_params = []
    prev_f = prev_c * img * img
    for f in fc_cfg:
        w = jax.random.normal(next(keys), (f, prev_f),
                              jnp.float32) * (1.0 / prev_f) ** 0.5
        b = jax.random.normal(next(keys), (f,), jnp.float32) * 0.1
        fc_params.append((w, b))
        prev_f = f

    # One-time parameter folding (host side), then a single fused Pallas kernel.
    folded = fold_network_params(conv_params, fc_params, conv_cfg, input_size,
                                 in_channels=1)

    out = conv_forward(x, folded)
    out = jax.block_until_ready(out)

    ref = reference_forward(x, conv_params, fc_params, conv_cfg)
    assert out.shape == (B, fc_cfg[-1]) and out.dtype == x.dtype
    assert jnp.allclose(out, ref, rtol=1e-4, atol=1e-4), \
        float(jnp.max(jnp.abs(out - ref)))

    print("KERNEL_OK")
</pallas_src>

<mosaic_0001>
module attributes {stable_mosaic.version = 11 : i64} {
  func.func @kernel(%arg0: i32, %arg1: memref<2x256xf32, #tpu.memory_space<vmem>>, %arg2: memref<256x256xf32, #tpu.memory_space<vmem>>, %arg3: memref<1x256xf32, #tpu.memory_space<vmem>>, %arg4: memref<256x128xf32, #tpu.memory_space<vmem>>, %arg5: memref<1x128xf32, #tpu.memory_space<vmem>>, %arg6: memref<128x32xf32, #tpu.memory_space<vmem>>, %arg7: memref<1x32xf32, #tpu.memory_space<vmem>>, %arg8: memref<32x10xf32, #tpu.memory_space<vmem>>, %arg9: memref<1x10xf32, #tpu.memory_space<vmem>>, %arg10: memref<2x10xf32, #tpu.memory_space<vmem>>) attributes {dimension_semantics = [#tpu.dimension_semantics<parallel>], iteration_bounds = array<i64: 1>, scalar_prefetch = 0 : i64, scratch_operands = 0 : i64, tpu.core_type = #tpu.core_type<tc>, window_params = [{transform_indices = @transform_0, window_bounds = array<i64: 2, 256>}, {pipeline_mode = #tpu.pipeline_mode<synchronous>, transform_indices = @transform_1, window_bounds = array<i64: 256, 256>}, {pipeline_mode = #tpu.pipeline_mode<synchronous>, transform_indices = @transform_2, window_bounds = array<i64: 1, 256>}, {pipeline_mode = #tpu.pipeline_mode<synchronous>, transform_indices = @transform_3, window_bounds = array<i64: 256, 128>}, {pipeline_mode = #tpu.pipeline_mode<synchronous>, transform_indices = @transform_4, window_bounds = array<i64: 1, 128>}, {pipeline_mode = #tpu.pipeline_mode<synchronous>, transform_indices = @transform_5, window_bounds = array<i64: 128, 32>}, {pipeline_mode = #tpu.pipeline_mode<synchronous>, transform_indices = @transform_6, window_bounds = array<i64: 1, 32>}, {pipeline_mode = #tpu.pipeline_mode<synchronous>, transform_indices = @transform_7, window_bounds = array<i64: 32, 10>}, {pipeline_mode = #tpu.pipeline_mode<synchronous>, transform_indices = @transform_8, window_bounds = array<i64: 1, 10>}, {transform_indices = @transform_9, window_bounds = array<i64: 2, 10>}]} {
    %c0 = arith.constant 0 : index
    %c0_0 = arith.constant 0 : index
    %0 = vector.load %arg1[%c0, %c0_0] : memref<2x256xf32, #tpu.memory_space<vmem>>, vector<2x256xf32>
    %c0_1 = arith.constant 0 : index
    %c0_2 = arith.constant 0 : index
    %1 = vector.load %arg2[%c0_1, %c0_2] : memref<256x256xf32, #tpu.memory_space<vmem>>, vector<256x256xf32>
    %c0_3 = arith.constant 0 : index
    %c0_4 = arith.constant 0 : index
    %2 = vector.load %arg3[%c0_3, %c0_4] : memref<1x256xf32, #tpu.memory_space<vmem>>, vector<1x256xf32>
    %cst = arith.constant dense<0.000000e+00> : vector<2x256xf32>
    %3 = tpu.matmul %0, %1, %cst {dimension_numbers = #tpu.dot_dimension_numbers<[1], [0], [0], [1], [0, 0, 1, 1], [], []>} : vector<2x256xf32>, vector<256x256xf32>, vector<2x256xf32> -> vector<2x256xf32>
    %4 = vector.broadcast %2 : vector<1x256xf32> to vector<2x256xf32>
    %5 = arith.addf %3, %4 : vector<2x256xf32>
    %cst_5 = arith.constant 0.000000e+00 : f32
    %6 = vector.broadcast %cst_5 : f32 to vector<2x256xf32>
    %7 = arith.maximumf %5, %6 : vector<2x256xf32>
    %c0_6 = arith.constant 0 : index
    %c0_7 = arith.constant 0 : index
    %8 = vector.load %arg4[%c0_6, %c0_7] : memref<256x128xf32, #tpu.memory_space<vmem>>, vector<256x128xf32>
    %c0_8 = arith.constant 0 : index
    %c0_9 = arith.constant 0 : index
    %9 = vector.load %arg5[%c0_8, %c0_9] : memref<1x128xf32, #tpu.memory_space<vmem>>, vector<1x128xf32>
    %cst_10 = arith.constant dense<0.000000e+00> : vector<2x128xf32>
    %10 = tpu.matmul %7, %8, %cst_10 {dimension_numbers = #tpu.dot_dimension_numbers<[1], [0], [0], [1], [0, 0, 1, 1], [], []>} : vector<2x256xf32>, vector<256x128xf32>, vector<2x128xf32> -> vector<2x128xf32>
    %11 = vector.broadcast %9 : vector<1x128xf32> to vector<2x128xf32>
    %12 = arith.addf %10, %11 : vector<2x128xf32>
    %cst_11 = arith.constant 0.000000e+00 : f32
    %13 = vector.broadcast %cst_11 : f32 to vector<2x128xf32>
    %14 = arith.maximumf %12, %13 : vector<2x128xf32>
    %c0_12 = arith.constant 0 : index
    %c0_13 = arith.constant 0 : index
    %15 = vector.load %arg6[%c0_12, %c0_13] : memref<128x32xf32, #tpu.memory_space<vmem>>, vector<128x32xf32>
    %c0_14 = arith.constant 0 : index
    %c0_15 = arith.constant 0 : index
    %16 = vector.load %arg7[%c0_14, %c0_15] : memref<1x32xf32, #tpu.memory_space<vmem>>, vector<1x32xf32>
    %cst_16 = arith.constant dense<0.000000e+00> : vector<2x32xf32>
    %17 = tpu.matmul %14, %15, %cst_16 {dimension_numbers = #tpu.dot_dimension_numbers<[1], [0], [0], [1], [0, 0, 1, 1], [], []>} : vector<2x128xf32>, vector<128x32xf32>, vector<2x32xf32> -> vector<2x32xf32>
    %18 = vector.broadcast %16 : vector<1x32xf32> to vector<2x32xf32>
    %19 = arith.addf %17, %18 : vector<2x32xf32>
    %cst_17 = arith.constant 0.000000e+00 : f32
    %20 = vector.broadcast %cst_17 : f32 to vector<2x32xf32>
    %21 = arith.maximumf %19, %20 : vector<2x32xf32>
    %c0_18 = arith.constant 0 : index
    %c0_19 = arith.constant 0 : index
    %22 = vector.load %arg8[%c0_18, %c0_19] : memref<32x10xf32, #tpu.memory_space<vmem>>, vector<32x10xf32>
    %c0_20 = arith.constant 0 : index
    %c0_21 = arith.constant 0 : index
    %23 = vector.load %arg9[%c0_20, %c0_21] : memref<1x10xf32, #tpu.memory_space<vmem>>, vector<1x10xf32>
    %cst_22 = arith.constant dense<0.000000e+00> : vector<2x10xf32>
    %24 = tpu.matmul %21, %22, %cst_22 {dimension_numbers = #tpu.dot_dimension_numbers<[1], [0], [0], [1], [0, 0, 1, 1], [], []>} : vector<2x32xf32>, vector<32x10xf32>, vector<2x10xf32> -> vector<2x10xf32>
    %25 = vector.broadcast %23 : vector<1x10xf32> to vector<2x10xf32>
    %26 = arith.addf %24, %25 : vector<2x10xf32>
    %c0_23 = arith.constant 0 : index
    %c0_24 = arith.constant 0 : index
    %27 = vector.load %arg10[%c0_23, %c0_24] : memref<2x10xf32, #tpu.memory_space<vmem>>, vector<2x10xf32>
    tpu.vector_store %arg10[%c0_23, %c0_24], %26 {strides = array<i32>} : memref<2x10xf32, #tpu.memory_space<vmem>>, vector<2x10xf32>,
    return
  }
  func.func @transform_0(%arg0: i32) -> (i32, i32) {
    %c0_i32 = arith.constant 0 : i32
    %c0_i32_0 = arith.constant 0 : i32
    return %arg0, %c0_i32 : i32, i32
  }
  func.func @transform_1(%arg0: i32) -> (i32, i32) {
    %c0_i32 = arith.constant 0 : i32
    %c0_i32_0 = arith.constant 0 : i32
    %c0_i32_1 = arith.constant 0 : i32
    return %c0_i32, %c0_i32_0 : i32, i32
  }
  func.func @transform_2(%arg0: i32) -> (i32, i32) {
    %c0_i32 = arith.constant 0 : i32
    %c0_i32_0 = arith.constant 0 : i32
    %c0_i32_1 = arith.constant 0 : i32
    return %c0_i32, %c0_i32_0 : i32, i32
  }
  func.func @transform_3(%arg0: i32) -> (i32, i32) {
    %c0_i32 = arith.constant 0 : i32
    %c0_i32_0 = arith.constant 0 : i32
    %c0_i32_1 = arith.constant 0 : i32
    return %c0_i32, %c0_i32_0 : i32, i32
  }
  func.func @transform_4(%arg0: i32) -> (i32, i32) {
    %c0_i32 = arith.constant 0 : i32
    %c0_i32_0 = arith.constant 0 : i32
    %c0_i32_1 = arith.constant 0 : i32
    return %c0_i32, %c0_i32_0 : i32, i32
  }
  func.func @transform_5(%arg0: i32) -> (i32, i32) {
    %c0_i32 = arith.constant 0 : i32
    %c0_i32_0 = arith.constant 0 : i32
    %c0_i32_1 = arith.constant 0 : i32
    return %c0_i32, %c0_i32_0 : i32, i32
  }
  func.func @transform_6(%arg0: i32) -> (i32, i32) {
    %c0_i32 = arith.constant 0 : i32
    %c0_i32_0 = arith.constant 0 : i32
    %c0_i32_1 = arith.constant 0 : i32
    return %c0_i32, %c0_i32_0 : i32, i32
  }
  func.func @transform_7(%arg0: i32) -> (i32, i32) {
    %c0_i32 = arith.constant 0 : i32
    %c0_i32_0 = arith.constant 0 : i32
    %c0_i32_1 = arith.constant 0 : i32
    return %c0_i32, %c0_i32_0 : i32, i32
  }
  func.func @transform_8(%arg0: i32) -> (i32, i32) {
    %c0_i32 = arith.constant 0 : i32
    %c0_i32_0 = arith.constant 0 : i32
    %c0_i32_1 = arith.constant 0 : i32
    return %c0_i32, %c0_i32_0 : i32, i32
  }
  func.func @transform_9(%arg0: i32) -> (i32, i32) {
    %c0_i32 = arith.constant 0 : i32
    %c0_i32_0 = arith.constant 0 : i32
    return %arg0, %c0_i32 : i32, i32
  }
}

</mosaic_0001>

<bundles_post_ra>
// kernel: tpu_custom_call.1
= control target key start
LH: loop header
LB: loop body
LE: loop exit
PB: predicated region body
PF: predicated region fallthrough
CT: control target
= control target key end

     0   :  { %14 = vsyncpa [#allocation3], 0  ;;  %s882_s0 = inlined_call_operand.vmem [shape: f32[2,256], index: 0, kind: input, shape index: {}]   ;;  %s883_s1 = inlined_call_operand.hbm [shape: f32[256,256], index: 1, kind: input, shape index: {}]   ;;  %s884_s2 = inlined_call_operand.vmem [shape: f32[1,256], index: 2, kind: input, shape index: {}]   ;;  %s885_s3 = inlined_call_operand.hbm [shape: f32[256,128], index: 3, kind: input, shape index: {}]   ;;  %s886_s4 = inlined_call_operand.vmem [shape: f32[1,128], index: 4, kind: input, shape index: {}]   ;;  %s887_s5 = inlined_call_operand.vmem [shape: f32[128,32], index: 5, kind: input, shape index: {}]   ;;  %s888_s6 = inlined_call_operand.vmem [shape: f32[1,32], index: 6, kind: input, shape index: {}]   ;;  %s889_s7 = inlined_call_operand.vmem [shape: f32[32,10], index: 7, kind: input, shape index: {}]   ;;  %s890_s8 = inlined_call_operand.vmem [shape: f32[1,10], index: 8, kind: input, shape index: {}]   ;;  %s891_s9 = inlined_call_operand.hbm [shape: f32[2,10], index: 9, kind: output, shape index: {}]  }
   0x1   :  { %15 = vsyncpa [#allocation6], 0 }
   0x2   :  { %16 = vsyncpa [#allocation4], 0  ;;  %s712_s30 = smov [#allocation2]  }
   0x3   :  { %s24_s10 = sshll.u32 %s712_s30, 4  ;;  %s25_s10 = int_to_ptr.vmem [resolvable:$true] %s24_s10 }
   0x4   :  { %s654_s11 = scalar_lea.vmem %s25_s10, 8192  ;;  %p659_p1 = scmp.lt.s32.totalorder %s25_s10, %s25_s10 }
   0x5   :  { %p655_p0 = scmp.ne.s32.totalorder %s25_s10, %s654_s11  ;;  %p660_p2 = scmp.lt.s32.totalorder %s654_s11, %s654_s11 }
   0x7   :  { %p661_p3 = por %p660_p2, %p659_p1 }
   0x9   :  { %p662_p4 = pnand %p661_p3, %p655_p0 }
   0xb   :  { %665 = shalt.err (!%p662_p4)
}
   0xc   :  { %s713_s12 = smov 256   ;;  %s714_s13 = smov 16  }
   0xd   :  { %30 = dma.hbm_to_vmem [thread:$0]  %s883_s1, 8192, %s25_s10, [#allocation3], %s713_s12, %s713_s12, %s714_s13  }
   0xe   :  { %s715_s16 = smov [#allocation5]  }
   0xf   :  { %s38_s17 = sshll.u32 %s715_s16, 4  ;;  %s39_s17 = int_to_ptr.vmem [resolvable:$true] %s38_s17 }
  0x10   :  { %s674_s18 = scalar_lea.vmem %s39_s17, 4096  ;;  %p679_p6 = scmp.lt.s32.totalorder %s39_s17, %s39_s17 }
  0x11   :  { %p675_p5 = scmp.ne.s32.totalorder %s39_s17, %s674_s18  ;;  %p680_p7 = scmp.lt.s32.totalorder %s674_s18, %s674_s18 }
  0x13   :  { %p681_p8 = por %p680_p7, %p679_p6 }
  0x15   :  { %p682_p9 = pnand %p681_p8, %p675_p5 }
  0x17   :  { %685 = shalt.err (!%p682_p9)
}
  0x18   :  { %s716_s19 = smov 128   ;;  %s717_s20 = smov 8  }
  0x19   :  { %44 = dma.hbm_to_vmem [thread:$0]  %s885_s3, 4096, %s39_s17, [#allocation6], %s716_s19, %s716_s19, %s717_s20  }
  0x1a   :  { %706 = dma.done.wait [#allocation3], 8192  }
  0x1b   :  { %707 = vsyncadd [#allocation3], 4294959104 }
  0x1c   :  { %708 = dma.done.wait [#allocation6], 4096  }
  0x1d   :  { %709 = vsyncadd [#allocation6], 4294963200  ;;  %v93_v0 = vld [vmem:[#allocation2 + $0xf8] sm:$0xff]  ;;  %v92_v1 = vld [vmem:[#allocation2 + $0xf0] sm:$0xff]  ;;  %vm719_vm0 = vmmov 0   ;;  %vm437_vm1 = vcmask 261120  }
  0x1e   :  { %v91_v2 = vld [vmem:[#allocation2 + $0xe8] sm:$0xff]  ;;  %149 = vmatprep.subr.mxu0 %v93_v0  ;;  %v90_v3 = vld [vmem:[#allocation2 + $0xe0] sm:$0xff]  ;;  %v89_v4 = vld [vmem:[#allocation2 + $0xd8] sm:$0xff]  ;;  %s720_s21 = smov [#allocation7]   ;;  %vm511_vm2 = vcmask 74752  }
  0x1f   :  { %150 = vmatpush1.msra.mxu0 %v92_v1  ;;  %v88_v5 = vld [vmem:[#allocation2 + $0xd0] sm:$0xff]  ;;  %v87_v6 = vld [vmem:[#allocation2 + $0xc8] sm:$0xff]  ;;  %v86_v7 = vld [vmem:[#allocation2 + $0xc0] sm:$0xff]  ;;  %s519_s22 = sshll.u32 %s720_s21, 4  ;;  %s520_s22 = int_to_ptr.vmem [resolvable:$true] %s519_s22 }
  0x20   :  { %151 = vmatprep.subr.mxu0 %v91_v2  ;;  %v85_v8 = vld [vmem:[#allocation2 + $0xb8] sm:$0xff]  ;;  %v84_v9 = vld [vmem:[#allocation2 + $0xb0] sm:$0xff]  ;;  %v83_v10 = vld [vmem:[#allocation2 + $0xa8] sm:$0xff]  ;;  %p691_p11 = scmp.lt.s32.totalorder %s520_s22, %s520_s22 }
  0x21   :  { %152 = vmatpush1.msra.mxu0 %v90_v3  ;;  %v82_v11 = vld [vmem:[#allocation2 + $0xa0] sm:$0xff]  ;;  %v81_v12 = vld [vmem:[#allocation2 + $0x98] sm:$0xff]  ;;  %v80_v13 = vld [vmem:[#allocation2 + $0x90] sm:$0xff] }
  0x22   :  { %153 = vmatprep.subr.mxu0 %v89_v4  ;;  %v79_v14 = vld [vmem:[#allocation2 + $0x88] sm:$0xff]  ;;  %v78_v15 = vld [vmem:[#allocation2 + $0x80] sm:$0xff]  ;;  %v77_v16 = vld [vmem:[#allocation2 + $0x78] sm:$0xff] }
  0x23   :  { %154 = vmatpush1.msra.mxu0 %v88_v5  ;;  %v76_v17 = vld [vmem:[#allocation2 + $0x70] sm:$0xff]  ;;  %v75_v18 = vld [vmem:[#allocation2 + $0x68] sm:$0xff]  ;;  %v74_v19 = vld [vmem:[#allocation2 + $0x60] sm:$0xff] }
  0x24   :  { %155 = vmatprep.subr.mxu0 %v87_v6  ;;  %v73_v20 = vld [vmem:[#allocation2 + $0x58] sm:$0xff]  ;;  %v72_v21 = vld [vmem:[#allocation2 + $0x50] sm:$0xff]  ;;  %v71_v22 = vld [vmem:[#allocation2 + $0x48] sm:$0xff] }
  0x25   :  { %156 = vmatpush1.msra.mxu0 %v86_v7  ;;  %v70_v23 = vld [vmem:[#allocation2 + $0x40] sm:$0xff]  ;;  %v253_v25 = vld [vmem:[#allocation5 + $0xf8] sm:$0xff]  ;;  %v252_v29 = vld [vmem:[#allocation5 + $0xf0] sm:$0xff] }
  0x26   :  { %157 = vmatprep.subr.mxu0 %v85_v8  ;;  %v780_v24 = vld.sshfl [vmem:[%s882_s0] sm:$0x33 pattern:$0x76325410]  ;;  %v69_v26 = vld [vmem:[#allocation2 + $0x38] sm:$0xff]  ;;  %534 = vmatprep.subr.mxu1 %v253_v25  ;;  %v68_v30 = vld [vmem:[#allocation2 + $0x30] sm:$0xff] }
  0x27   :  { %158 = vmatpush1.msra.mxu0 %v84_v9  ;;  %v146_v27 = vcombine.high %v780_v24, %v780_v24  ;;  %v237_v28 = vld [vmem:[#allocation5 + $0x78] sm:$0xff]  ;;  %v236_v31 = vld [vmem:[#allocation5 + $0x70] sm:$0xff]  ;;  %v67_v32 = vld [vmem:[#allocation2 + $0x28] sm:$0xff] }
  0x28   :  { %159 = vmatprep.subr.mxu0 %v83_v10  ;;  %535 = vmatpush3.msra.mxu1 %v237_v28  ;;  %v251_v33 = vld [vmem:[#allocation5 + $0xe8] sm:$0xff]  ;;  %v66_v34 = vld [vmem:[#allocation2 + $0x20] sm:$0xff]  ;;  %v65_v36 = vld [vmem:[#allocation2 + $0x18] sm:$0xff] }
  0x29   :  { %160 = vmatpush1.msra.mxu0 %v82_v11  ;;  %213 = vmatprep.mubr.f32.mxu0 %v146_v27  ;;  %v235_v35 = vld [vmem:[#allocation5 + $0x68] sm:$0xff]  ;;  %v250_v37 = vld [vmem:[#allocation5 + $0xe0] sm:$0xff]  ;;  %v64_v38 = vld [vmem:[#allocation2 + $0x10] sm:$0xff] }
  0x2a   :  { %161 = vmatprep.subr.mxu0 %v81_v12  ;;  %536 = vmatprep.subr.mxu1 %v252_v29  ;;  %v234_v39 = vld [vmem:[#allocation5 + $0x60] sm:$0xff]  ;;  %v63_v40 = vld [vmem:[#allocation2 + $0x8] sm:$0xff]  ;;  %v249_v41 = vld [vmem:[#allocation5 + $0xd8] sm:$0xff] }
  0x2b   :  { %162 = vmatpush1.msra.mxu0 %v80_v13  ;;  %537 = vmatpush3.msra.mxu1 %v236_v31  ;;  %v62_v42 = vld [vmem:[#allocation2] sm:$0xff]  ;;  %v233_v43 = vld [vmem:[#allocation5 + $0x58] sm:$0xff]  ;;  %v248_v45 = vld [vmem:[#allocation5 + $0xd0] sm:$0xff] }
  0x2c   :  { %163 = vmatprep.subr.mxu0 %v79_v14  ;;  %538 = vmatprep.subr.mxu1 %v251_v33  ;;  %v125_v44 = vld [vmem:[#allocation2 + $0x1f8] sm:$0xff]  ;;  %v124_v46 = vld [vmem:[#allocation2 + $0x1f0] sm:$0xff]  ;;  %v123_v48 = vld [vmem:[#allocation2 + $0x1e8] sm:$0xff] }
  0x2d   :  { %164 = vmatpush1.msra.mxu0 %v78_v15  ;;  %539 = vmatpush3.msra.mxu1 %v235_v35  ;;  %v232_v47 = vld [vmem:[#allocation5 + $0x50] sm:$0xff]  ;;  %v247_v49 = vld [vmem:[#allocation5 + $0xc8] sm:$0xff]  ;;  %v122_v50 = vld [vmem:[#allocation2 + $0x1e0] sm:$0xff]  ;;  %v718_v35 = vmov 0.0  }
  0x2e   :  { %165 = vmatprep.subr.mxu0 %v77_v16  ;;  %540 = vmatprep.subr.mxu1 %v250_v37  ;;  %v231_v51 = vld [vmem:[#allocation5 + $0x48] sm:$0xff]  ;;  %v121_v52 = vld [vmem:[#allocation2 + $0x1d8] sm:$0xff]  ;;  %v246_v53 = vld [vmem:[#allocation5 + $0xc0] sm:$0xff] }
  0x2f   :  { %166 = vmatpush1.msra.mxu0 %v76_v17  ;;  %541 = vmatpush3.msra.mxu1 %v234_v39  ;;  %v120_v54 = vld [vmem:[#allocation2 + $0x1d0] sm:$0xff]  ;;  %v230_v55 = vld [vmem:[#allocation5 + $0x40] sm:$0xff]  ;;  %v119_v56 = vld [vmem:[#allocation2 + $0x1c8] sm:$0xff] }
  0x30   :  { %167 = vmatprep.subr.mxu0 %v75_v18  ;;  %542 = vmatprep.subr.mxu1 %v249_v41  ;;  %v245_v57 = vld [vmem:[#allocation5 + $0xb8] sm:$0xff]  ;;  %v118_v58 = vld [vmem:[#allocation2 + $0x1c0] sm:$0xff]  ;;  %v244_v61 = vld [vmem:[#allocation5 + $0xb0] sm:$0xff] }
  0x31   :  { %168 = vmatpush1.msra.mxu0 %v74_v19  ;;  %543 = vmatpush3.msra.mxu1 %v233_v43  ;;  %v229_v59 = vld [vmem:[#allocation5 + $0x38] sm:$0xff]  ;;  %v116_v62 = vld [vmem:[#allocation2 + $0x1b0] sm:$0xff]  ;;  %v115_v0 = vld [vmem:[#allocation2 + $0x1a8] sm:$0xff] }
  0x32   :  { %169 = vmatprep.subr.mxu0 %v73_v20  ;;  %544 = vmatprep.subr.mxu1 %v248_v45  ;;  %v117_v60 = vld [vmem:[#allocation2 + $0x1b8] sm:$0xff]  ;;  %v228_v63 = vld [vmem:[#allocation5 + $0x30] sm:$0xff]  ;;  %v243_v1 = vld [vmem:[#allocation5 + $0xa8] sm:$0xff] }
  0x33   :  { %170 = vmatpush1.msra.mxu0 %v72_v21  ;;  %545 = vmatpush3.msra.mxu1 %v232_v47  ;;  %v114_v2 = vld [vmem:[#allocation2 + $0x1a0] sm:$0xff]  ;;  %v227_v3 = vld [vmem:[#allocation5 + $0x28] sm:$0xff]  ;;  %v113_v4 = vld [vmem:[#allocation2 + $0x198] sm:$0xff] }
  0x34   :  { %171 = vmatprep.subr.mxu0 %v71_v22  ;;  %546 = vmatprep.subr.mxu1 %v247_v49  ;;  %v242_v5 = vld [vmem:[#allocation5 + $0xa0] sm:$0xff]  ;;  %v112_v6 = vld [vmem:[#allocation2 + $0x190] sm:$0xff]  ;;  %v111_v8 = vld [vmem:[#allocation2 + $0x188] sm:$0xff] }
  0x35   :  { %172 = vmatpush1.msra.mxu0 %v70_v23  ;;  %547 = vmatpush3.msra.mxu1 %v231_v51  ;;  %v226_v7 = vld [vmem:[#allocation5 + $0x20] sm:$0xff]  ;;  %v109_v10 = vld [vmem:[#allocation2 + $0x178] sm:$0xff]  ;;  %v108_v11 = vld [vmem:[#allocation2 + $0x170] sm:$0xff] }
  0x36   :  { %173 = vmatprep.subr.mxu0 %v69_v26  ;;  %548 = vmatprep.subr.mxu1 %v246_v53  ;;  %v110_v9 = vld [vmem:[#allocation2 + $0x180] sm:$0xff]  ;;  %v107_v12 = vld [vmem:[#allocation2 + $0x168] sm:$0xff]  ;;  %v105_v14 = vld [vmem:[#allocation2 + $0x158] sm:$0xff] }
  0x37   :  { %174 = vmatpush1.msra.mxu0 %v68_v30  ;;  %549 = vmatpush3.msra.mxu1 %v230_v55  ;;  %v106_v13 = vld [vmem:[#allocation2 + $0x160] sm:$0xff]  ;;  %v104_v15 = vld [vmem:[#allocation2 + $0x150] sm:$0xff]  ;;  %v103_v16 = vld [vmem:[#allocation2 + $0x148] sm:$0xff] }
  0x38   :  { %175 = vmatprep.subr.mxu0 %v67_v32  ;;  %550 = vmatprep.subr.mxu1 %v245_v57  ;;  %v102_v17 = vld [vmem:[#allocation2 + $0x140] sm:$0xff]  ;;  %v101_v18 = vld [vmem:[#allocation2 + $0x138] sm:$0xff]  ;;  %v100_v19 = vld [vmem:[#allocation2 + $0x130] sm:$0xff] }
  0x39   :  { %176 = vmatpush1.msra.mxu0 %v66_v34  ;;  %551 = vmatpush3.msra.mxu1 %v229_v59  ;;  %v99_v20 = vld [vmem:[#allocation2 + $0x128] sm:$0xff]  ;;  %v98_v21 = vld [vmem:[#allocation2 + $0x120] sm:$0xff]  ;;  %v97_v22 = vld [vmem:[#allocation2 + $0x118] sm:$0xff] }
  0x3a   :  { %177 = vmatprep.subr.mxu0 %v65_v36  ;;  %552 = vmatprep.subr.mxu1 %v244_v61  ;;  %v96_v23 = vld [vmem:[#allocation2 + $0x110] sm:$0xff]  ;;  %v95_v25 = vld [vmem:[#allocation2 + $0x108] sm:$0xff]  ;;  %v94_v26 = vld [vmem:[#allocation2 + $0x100] sm:$0xff] }
  0x3b   :  { %178 = vmatpush1.msra.mxu0 %v64_v38  ;;  %553 = vmatpush3.msra.mxu1 %v228_v63  ;;  %v241_v27 = vld [vmem:[#allocation5 + $0x98] sm:$0xff]  ;;  %v240_v29 = vld [vmem:[#allocation5 + $0x90] sm:$0xff]  ;;  %v239_v31 = vld [vmem:[#allocation5 + $0x88] sm:$0xff] }
  0x3c   :  { %179 = vmatprep.subr.mxu0 %v63_v40  ;;  %554 = vmatprep.subr.mxu1 %v243_v1  ;;  %v225_v28 = vld [vmem:[#allocation5 + $0x18] sm:$0xff]  ;;  %v224_v30 = vld [vmem:[#allocation5 + $0x10] sm:$0xff]  ;;  %v223_v32 = vld [vmem:[#allocation5 + $0x8] sm:$0xff] }
  0x3d   :  { %180 = vmatpush1.msra.mxu0 %v62_v42  ;;  %555 = vmatpush3.msra.mxu1 %v227_v3  ;;  %v238_v33 = vld [vmem:[#allocation5 + $0x80] sm:$0xff]  ;;  %v346_v49 = vld [vmem:[%s887_s5 + $0x70] sm:$0xff] }
  0x3e   :  { %181 = vmatprep.subr.mxu0 %v125_v44  ;;  %556 = vmatprep.subr.mxu1 %v242_v5  ;;  %v222_v34 = vld [vmem:[#allocation5] sm:$0xff]  ;;  %v342_v53 = vld [vmem:[%s887_s5 + $0x50] sm:$0xff] }
  0x3f   :  { %182 = vmatpush2.msra.mxu0 %v124_v46  ;;  %557 = vmatpush3.msra.mxu1 %v226_v7  ;;  %v126_v38 = vld [vmem:[%s884_s2] sm:$0x3]  ;;  %v338_v57 = vld [vmem:[%s887_s5 + $0x30] sm:$0xff] }
  0x40   :  { %183 = vmatprep.subr.mxu0 %v123_v48  ;;  %558 = vmatprep.subr.mxu1 %v241_v27  ;;  %v347_v48 = vld [vmem:[%s887_s5 + $0x78] sm:$0xff]  ;;  %v344_v51 = vld [vmem:[%s887_s5 + $0x60] sm:$0xff]  ;;  %v334_v61 = vld [vmem:[%s887_s5 + $0x10] sm:$0xff] }
  0x41   :  { %184 = vmatpush2.msra.mxu0 %v122_v50  ;;  %559 = vmatpush3.msra.mxu1 %v225_v28  ;;  %v345_v50 = vld [vmem:[%s887_s5 + $0x68] sm:$0xff]  ;;  %v340_v55 = vld [vmem:[%s887_s5 + $0x40] sm:$0xff]  ;;  %v428_v7 = vld [vmem:[%s889_s7 + $0x10] sm:$0xff] }
  0x42   :  { %185 = vmatprep.subr.mxu0 %v121_v52  ;;  %560 = vmatprep.subr.mxu1 %v240_v29  ;;  %v343_v52 = vld [vmem:[%s887_s5 + $0x58] sm:$0xff]  ;;  %v336_v59 = vld [vmem:[%s887_s5 + $0x20] sm:$0xff] }
  0x43   :  { %186 = vmatpush2.msra.mxu0 %v120_v54  ;;  %561 = vmatpush3.msra.mxu1 %v224_v30  ;;  %v341_v54 = vld [vmem:[%s887_s5 + $0x48] sm:$0xff]  ;;  %v332_v63 = vld [vmem:[%s887_s5] sm:$0xff] }
  0x44   :  { %187 = vmatprep.subr.mxu0 %v119_v56  ;;  %562 = vmatprep.subr.mxu1 %v239_v31  ;;  %v339_v56 = vld [vmem:[%s887_s5 + $0x38] sm:$0xff] }
  0x45   :  { %188 = vmatpush2.msra.mxu0 %v118_v58  ;;  %563 = vmatpush3.msra.mxu1 %v223_v32  ;;  %v337_v58 = vld [vmem:[%s887_s5 + $0x28] sm:$0xff] }
  0x46   :  { %189 = vmatprep.subr.mxu0 %v117_v60  ;;  %564 = vmatprep.subr.mxu1 %v238_v33  ;;  %v335_v60 = vld [vmem:[%s887_s5 + $0x18] sm:$0xff] }
  0x47   :  { %190 = vmatpush2.msra.mxu0 %v116_v62  ;;  %565 = vmatpush3.msra.mxu1 %v222_v34  ;;  %v333_v62 = vld [vmem:[%s887_s5 + $0x8] sm:$0xff] }
  0x48   :  { %191 = vmatprep.subr.mxu0 %v115_v0  ;;  %591 = vmatprep.subr.mxu1 %v718_v35  ;;  %v429_v0 = vld [vmem:[%s889_s7 + $0x18] sm:$0xff] }
  0x49   :  { %192 = vmatpush2.msra.mxu0 %v114_v2  ;;  %v530_v2 = vld [vmem:[%s886_s4] ss:$0 sm:$0xff] }
  0x4a   :  { %193 = vmatprep.subr.mxu0 %v113_v4 }
  0x4b   :  { %194 = vmatpush2.msra.mxu0 %v112_v6 }
  0x4c   :  { %195 = vmatprep.subr.mxu0 %v111_v8  ;;  %v427_v8 = vld [vmem:[%s889_s7 + $0x8] sm:$0xff] }
  0x4d   :  { %196 = vmatpush2.msra.mxu0 %v110_v9  ;;  %v426_v9 = vld [vmem:[%s889_s7] sm:$0xff]  ;;  %s686_s7 = scalar_lea.vmem %s520_s22, 32 }
  0x4e   :  { %197 = vmatprep.subr.mxu0 %v109_v10  ;;  %v531_v10 = vld [vmem:[%s888_s6] ss:$0 sm:$0xff]  ;;  %p687_p10 = scmp.ne.s32.totalorder %s520_s22, %s686_s7  ;;  %p692_p12 = scmp.lt.s32.totalorder %s686_s7, %s686_s7 }
  0x4f   :  { %198 = vmatpush2.msra.mxu0 %v108_v11 }
  0x50   :  { %199 = vmatprep.subr.mxu0 %v107_v12  ;;  %p693_p13 = por %p692_p12, %p691_p11 }
  0x51   :  { %200 = vmatpush2.msra.mxu0 %v106_v13 }
  0x52   :  { %201 = vmatprep.subr.mxu0 %v105_v14  ;;  %p694_p0 = pnand %p693_p13, %p687_p10 }
  0x53   :  { %202 = vmatpush2.msra.mxu0 %v104_v15  ;;  %v532_v15 = vld [vmem:[%s890_s8] ss:$0 sm:$0xff] }
  0x54   :  { %203 = vmatprep.subr.mxu0 %v103_v16 }
  0x55   :  { %204 = vmatpush2.msra.mxu0 %v102_v17 }
  0x56   :  { %205 = vmatprep.subr.mxu0 %v101_v18 }
  0x57   :  { %206 = vmatpush2.msra.mxu0 %v100_v19 }
  0x58   :  { %207 = vmatprep.subr.mxu0 %v99_v20 }
  0x59   :  { %208 = vmatpush2.msra.mxu0 %v98_v21 }
  0x5a   :  { %209 = vmatprep.subr.mxu0 %v97_v22 }
  0x5b   :  { %210 = vmatpush2.msra.mxu0 %v96_v23 }
  0x5c   :  { %211 = vmatprep.subr.mxu0 %v95_v25 }
  0x5d   :  { %212 = vmatpush2.msra.mxu0 %v94_v26 }
  0x5e   :  { %214 = vmatmul.mubr.f32.vlgmr.msra.gmra.mxu0 %v780_v24  ;;  %626 = vmatprep.subr.mxu0 %v718_v35  ;;  %v128_v24 = vlaneseq }
  0x5f   :  { %634 = vmatprep.mubr.msk.f32.mxu0 %vm719_vm0, %v718_v35  ;;  %627 = vmatpush3.msra.mxu0 %v429_v0 }
  0x60   :  { %v129_v36 = vshrl.u32 %v128_v24, 7  ;;  %628 = vmatprep.subr.mxu0 %v718_v35 }
  0x61   :  { %629 = vmatpush3.msra.mxu0 %v428_v7 }
  0x62   :  { %v130_v37 = vsub.s32 0, %v129_v36  ;;  %v134_v39 = vsub.s32 1, %v129_v36  ;;  %630 = vmatprep.subr.mxu0 %v718_v35 }
  0x63   :  { %631 = vmatpush3.msra.mxu0 %v427_v8 }
  0x64   :  { %v131_v40 = vrot.slane %v126_v38, %v130_v37  ;;  %v135_v41 = vrot.slane %v126_v38, %v134_v39  ;;  %632 = vmatprep.subr.mxu0 %v718_v35 }
  0x65   :  { %633 = vmatpush3.msra.mxu0 %v426_v9 }
 0x11e   :  { %v215_v42 = vpop.f32.mrf.mxu0 }
 0x11f   :  { %v216_v43 = vadd.f32 %v215_v42, %v131_v40 }
 0x120   :  { %v217_v44 = vpop.f32.mrf.mxu0 }
 0x121   :  { %v218_v45 = vadd.f32 %v217_v44, %v135_v41  ;;  %v220_v47 = vmax.f32 %v216_v43, 0.0 }
 0x123   :  { %v221_v46 = vmax.f32 %v218_v45, 0.0 }
 0x125   :  { %325 = vmatprep.mubr.f32.mxu1 %v221_v46 }
 0x126   :  { %326 = vmatmul.mubr.f32.vlgmr.msra.gmra.mxu1 %v220_v47 }
 0x127   :  { %592 = vmatpush3.msra.mxu1 %v347_v48  ;;  %623 = vmatprep.mubr.msk.f32.mxu1 %vm719_vm0, %v718_v35 }
 0x128   :  { %593 = vmatprep.subr.mxu1 %v718_v35 }
 0x129   :  { %594 = vmatpush3.msra.mxu1 %v346_v49 }
 0x12a   :  { %595 = vmatprep.subr.mxu1 %v718_v35 }
 0x12b   :  { %596 = vmatpush3.msra.mxu1 %v345_v50 }
 0x12c   :  { %597 = vmatprep.subr.mxu1 %v718_v35 }
 0x12d   :  { %598 = vmatpush3.msra.mxu1 %v344_v51 }
 0x12e   :  { %599 = vmatprep.subr.mxu1 %v718_v35 }
 0x12f   :  { %600 = vmatpush3.msra.mxu1 %v343_v52 }
 0x130   :  { %601 = vmatprep.subr.mxu1 %v718_v35 }
 0x131   :  { %602 = vmatpush3.msra.mxu1 %v342_v53 }
 0x132   :  { %603 = vmatprep.subr.mxu1 %v718_v35 }
 0x133   :  { %604 = vmatpush3.msra.mxu1 %v341_v54 }
 0x134   :  { %605 = vmatprep.subr.mxu1 %v718_v35 }
 0x135   :  { %606 = vmatpush3.msra.mxu1 %v340_v55 }
 0x136   :  { %607 = vmatprep.subr.mxu1 %v718_v35 }
 0x137   :  { %608 = vmatpush3.msra.mxu1 %v339_v56 }
 0x138   :  { %609 = vmatprep.subr.mxu1 %v718_v35 }
 0x139   :  { %610 = vmatpush3.msra.mxu1 %v338_v57 }
 0x13a   :  { %611 = vmatprep.subr.mxu1 %v718_v35 }
 0x13b   :  { %612 = vmatpush3.msra.mxu1 %v337_v58 }
 0x13c   :  { %613 = vmatprep.subr.mxu1 %v718_v35 }
 0x13d   :  { %614 = vmatpush3.msra.mxu1 %v336_v59 }
 0x13e   :  { %615 = vmatprep.subr.mxu1 %v718_v35 }
 0x13f   :  { %616 = vmatpush3.msra.mxu1 %v335_v60 }
 0x140   :  { %617 = vmatprep.subr.mxu1 %v718_v35 }
 0x141   :  { %618 = vmatpush3.msra.mxu1 %v334_v61 }
 0x142   :  { %619 = vmatprep.subr.mxu1 %v718_v35 }
 0x143   :  { %620 = vmatpush3.msra.mxu1 %v333_v62 }
 0x144   :  { %621 = vmatprep.subr.mxu1 %v718_v35 }
 0x145   :  { %622 = vmatpush3.msra.mxu1 %v332_v63 }
 0x1e6   :  { %v566_v1 = vpop.f32.mrf.mxu1 }
 0x1e8   :  { %v567_v3 = vpop.f32.mrf.mxu1 }
 0x1e9   :  { %v568_v4 = vadd.f32 %v567_v3, %v566_v1 }
 0x1eb   :  { %v328_v5 = vadd.f32 %v568_v4, %v530_v2 }
 0x1ed   :  { %v331_v6 = vmax.f32 %v328_v5, 0.0 }
 0x1ef   :  { %624 = vmatmul.mubr.f32.vlgmr.msra.gmra.mxu1 %v331_v6 }
 0x2af   :  { %v421_v11 = vpop.f32.mrf.mxu1 }
 0x2b0   :  { %v422_v12 = vadd.f32 %v531_v10, %v421_v11 }
 0x2b1   :  { %v625_v13 = vpop.f32.mrf.mxu1 }
 0x2b2   :  { %v425_v14 = vmax.f32 %v422_v12, 0.0 }
 0x2b4   :  { %635 = vmatmul.mubr.msk.f32.vlgmr.msra.gmra.mxu0 %vm437_vm1, %v425_v14 }
 0x374   :  { %v507_v16 = vpop.f32.mrf.mxu0 }
 0x375   :  { %v508_v17 = vadd.f32 %v532_v15, %v507_v16 }
 0x376   :  { %v636_v18 = vpop.f32.mrf.mxu0 }
 0x377   :  { %512 = vst.msk [vmem:[#allocation7] sm:$0x3] %vm511_vm2, %v508_v17 }
 0x378   :  { %697 = shalt.err (!%p694_p0)
}
 0x379   :  { %522 = dma.vmem_to_hbm [thread:$0]  %s520_s22, 32, %s891_s9, [#allocation4]  }
 0x37a   :  { %710 = dma.done.wait [#allocation4], 32  }
 0x37b   :  { %711 = vsyncadd [#allocation4], 4294967264 }
 0x37c   :  { %526 = vsyncpa [#allocation3], 1 }
 0x37d   :  { %527 = vsyncpa [#allocation6], 1 }
 0x37e   :  { %528 = vsyncpa [#allocation4], 1 }

</bundles_post_ra>
